<compile_context>
chip_gen: v7x
topology: tpu7x:2x2x1
jax: 0.10.0
libtpu: 0.0.40
codegen_flags: <defaults>
</compile_context>

<pallas_src>
import jax
import jax.numpy as jnp
from jax import lax
from jax.experimental import pallas as pl
from jax.experimental.pallas import tpu as pltpu

# "NT" dot dims: contract the last axis of both operands (lhs natural, rhs transposed).
_NT_DIMS = (((1,), (1,)), ((), ()))


def _logreg_kernel(x_ref, w_ref, b_ref, o_ref):
    # x_ref: (TB, D) VMEM (native dtype)   w_ref: (1, D) f32 VMEM
    # b_ref: (1,)    f32 SMEM              o_ref: (1, TB) f32 VMEM (lane-dense row)
    x = x_ref[...]
    if x.dtype != jnp.float32:
        x = x.astype(jnp.float32)          # upcast in VMEM; compute slack absorbs it
    # NT dot: w(1,D) . x(TB,D)^T -> (1, TB): batch lands directly on lanes.
    z = lax.dot_general(w_ref[...], x, _NT_DIMS,
                        preferred_element_type=jnp.float32)
    o_ref[...] = jax.nn.sigmoid(z + b_ref[0])


def _round_up(n, m):
    return ((n + m - 1) // m) * m


def _tpu_generation_params():
    """Return (max_block_rows, vmem_limit_cap_bytes, is_v7)."""
    vmem_phys = None
    try:
        vmem_phys = int(pltpu.get_tpu_info().vmem_capacity_bytes)
    except Exception:
        pass
    kind = ""
    try:
        kind = jax.devices()[0].device_kind.lower()
    except Exception:
        pass
    is_v7 = ("7" in kind) or (vmem_phys is not None and vmem_phys <= 96 * 1024 * 1024)
    if vmem_phys is None:
        vmem_phys = (64 if is_v7 else 128) * 1024 * 1024
    if is_v7:
        # 3.2 TB/s HBM: need ~2 MiB/step to amortize ~0.35 us per-step overhead;
        # 64 MiB physical VMEM -> keep scoped limit <= 32 MiB.
        return 16384, min(32 * 1024 * 1024, vmem_phys // 2), True
    # v5e / v6e: ~0.8-1.4 TB/s; ~1 MiB/step is already ~80%+ of roofline.
    return 8192, min(48 * 1024 * 1024, vmem_phys // 2), False


def logistic_regression_forward(x, weight, bias):
    """x: [B, D] (f32 or bf16); weight: [1, D] f32 (torch layout); bias: [1] -> [B, 1] f32."""
    B, D = x.shape
    weight = weight.reshape(1, D).astype(jnp.float32)
    bias = bias.reshape(1).astype(jnp.float32)

    max_rows, vmem_cap, is_v7 = _tpu_generation_params()

    # ---- tile selection (TB multiple of 128 for a lane-dense output row) ----
    d_pad = _round_up(D, 128)                                   # lane-padded width in VMEM
    # Keep double-buffered, lane-padded (f32-equivalent) x tiles within ~20 MiB.
    tb_cap = max(128, (20 * 1024 * 1024) // (2 * 4 * d_pad))
    tb = min(max_rows, tb_cap, _round_up(B, 128))
    if is_v7:
        # Keep >= 4 grid steps so both TensorCores get >= 2 steps each.
        tb = min(tb, _round_up(pl.cdiv(B, 4), 128))
    tb = max(128, (tb // 128) * 128)
    grid = (pl.cdiv(B, tb),)                                    # partial last block allowed

    # ---- VMEM budget: estimate + headroom, capped per generation ----
    vmem_est = 4 * (2 * tb * d_pad          # double-buffered x tiles (f32-equivalent)
                    + tb * d_pad            # in-kernel f32 upcast temporary
                    + 2 * 8 * tb            # (1, TB) output tiles (sublane padded)
                    + 2 * 8 * d_pad)        # resident weight
    vmem_limit = int(min(vmem_cap, max(8 * 1024 * 1024, vmem_est + 4 * 1024 * 1024)))

    cost = pl.CostEstimate(
        flops=2 * B * D,
        transcendentals=B,
        bytes_accessed=int(x.size * x.dtype.itemsize + 4 * (D + 1 + B)),
    )

    out_row = pl.pallas_call(
        _logreg_kernel,
        out_shape=jax.ShapeDtypeStruct((1, B), jnp.float32),
        grid_spec=pltpu.PrefetchScalarGridSpec(
            num_scalar_prefetch=0,
            grid=grid,
            in_specs=[
                # TODO(synk): if a trace still shows exposed DMA waits at these tile
                # sizes, add pipeline_mode=pl.Buffered(3) on this x spec only.
                pl.BlockSpec((tb, D), lambda i: (i, 0)),             # x tile
                pl.BlockSpec((1, D), lambda i: (0, 0)),              # weight, resident
                pl.BlockSpec(memory_space=pltpu.MemorySpace.SMEM),   # bias scalar
            ],
            out_specs=pl.BlockSpec((1, tb), lambda i: (0, i)),       # lane-dense row
        ),
        compiler_params=pltpu.CompilerParams(
            dimension_semantics=("parallel",),
            vmem_limit_bytes=vmem_limit,
        ),
        cost_estimate=cost,
    )(x, weight, bias)

    # (1, B) row -> (B, 1) column; order-preserving reshape, no extra HBM pass of x.
    return out_row.reshape(B, 1)


if __name__ == "__main__":
    key = jax.random.PRNGKey(0)
    k_x, k_w, k_b, k_x2, k_x3 = jax.random.split(key, 5)

    batch, input_dim = 8, 32
    x = jax.random.normal(k_x, (batch, input_dim), dtype=jnp.float32)

    # Deterministic params mimicking nn.Linear(input_dim, 1) init:
    # weight, bias ~ U(-1/sqrt(D), 1/sqrt(D))
    bound = 1.0 / jnp.sqrt(jnp.float32(input_dim))
    weight = jax.random.uniform(k_w, (1, input_dim), minval=-bound, maxval=bound,
                                dtype=jnp.float32)
    bias = jax.random.uniform(k_b, (1,), minval=-bound, maxval=bound,
                              dtype=jnp.float32)

    out = jax.block_until_ready(logistic_regression_forward(x, weight, bias))
    ref = jax.nn.sigmoid(x @ weight.T + bias)
    assert out.shape == (batch, 1)
    assert jnp.allclose(out, ref, atol=1e-5, rtol=1e-5), "mismatch vs reference (small)"

    # Multi-tile grid + non-divisible batch (exercises the partial boundary block path).
    big_batch = 2600
    x2 = jax.random.normal(k_x2, (big_batch, input_dim), dtype=jnp.float32)
    out2 = jax.block_until_ready(logistic_regression_forward(x2, weight, bias))
    ref2 = jax.nn.sigmoid(x2 @ weight.T + bias)
    assert out2.shape == (big_batch, 1)
    assert jnp.allclose(out2, ref2, atol=1e-5, rtol=1e-5), "mismatch vs reference (big)"

    # Native bf16 input path (no wrapper-side upcast pass over HBM), odd batch.
    bf_batch = 4097
    x3 = jax.random.normal(k_x3, (bf_batch, input_dim), dtype=jnp.float32).astype(jnp.bfloat16)
    out3 = jax.block_until_ready(logistic_regression_forward(x3, weight, bias))
    ref3 = jax.nn.sigmoid(x3.astype(jnp.float32) @ weight.T + bias)
    assert out3.shape == (bf_batch, 1)
    assert jnp.allclose(out3, ref3, atol=1e-4, rtol=1e-4), "mismatch vs reference (bf16)"

    print("KERNEL_OK")
</pallas_src>

<mosaic_0001>
module attributes {stable_mosaic.version = 11 : i64} {
  func.func @_logreg_kernel(%arg0: i32, %arg1: memref<128x32xf32, #tpu.memory_space<vmem>>, %arg2: memref<1x32xf32, #tpu.memory_space<vmem>>, %arg3: memref<1xf32, #tpu.memory_space<smem>>, %arg4: memref<1x128xf32, #tpu.memory_space<vmem>>) attributes {dimension_semantics = [#tpu.dimension_semantics<parallel>], iteration_bounds = array<i64: 1>, scalar_prefetch = 0 : i64, scratch_operands = 0 : i64, tpu.core_type = #tpu.core_type<tc>, window_params = [{transform_indices = @transform_0, window_bounds = array<i64: 128, 32>}, {pipeline_mode = #tpu.pipeline_mode<synchronous>, transform_indices = @transform_1, window_bounds = array<i64: 1, 32>}, {transform_indices = @transform_2, window_bounds = array<i64: 1>}, {transform_indices = @transform_3, window_bounds = array<i64: 1, 128>}]} {
    %c0 = arith.constant 0 : index
    %c0_0 = arith.constant 0 : index
    %0 = vector.load %arg1[%c0, %c0_0] : memref<128x32xf32, #tpu.memory_space<vmem>>, vector<128x32xf32>
    %c0_1 = arith.constant 0 : index
    %c0_2 = arith.constant 0 : index
    %1 = vector.load %arg2[%c0_1, %c0_2] : memref<1x32xf32, #tpu.memory_space<vmem>>, vector<1x32xf32>
    %cst = arith.constant dense<0.000000e+00> : vector<1x128xf32>
    %2 = tpu.matmul %1, %0, %cst {dimension_numbers = #tpu.dot_dimension_numbers<[1], [1], [0], [0], [0, 0, 1, 0], [], []>} : vector<1x32xf32>, vector<128x32xf32>, vector<1x128xf32> -> vector<1x128xf32>
    %c0_3 = arith.constant 0 : index
    %3 = memref.load %arg3[%c0_3] : memref<1xf32, #tpu.memory_space<smem>>
    %4 = vector.broadcast %3 : f32 to vector<1x128xf32>
    %5 = arith.addf %2, %4 : vector<1x128xf32>
    %6 = arith.negf %5 : vector<1x128xf32>
    %7 = math.exp %6 : vector<1x128xf32>
    %cst_4 = arith.constant 1.000000e+00 : f32
    %8 = vector.broadcast %cst_4 : f32 to vector<1x128xf32>
    %9 = arith.addf %8, %7 : vector<1x128xf32>
    %10 = arith.divf %8, %9 : vector<1x128xf32>
    %c0_5 = arith.constant 0 : index
    %c0_6 = arith.constant 0 : index
    %11 = vector.load %arg4[%c0_5, %c0_6] : memref<1x128xf32, #tpu.memory_space<vmem>>, vector<1x128xf32>
    tpu.vector_store %arg4[%c0_5, %c0_6], %10 {strides = array<i32>} : memref<1x128xf32, #tpu.memory_space<vmem>>, vector<1x128xf32>,
    return
  }
  func.func @transform_0(%arg0: i32) -> (i32, i32) {
    %c0_i32 = arith.constant 0 : i32
    %c0_i32_0 = arith.constant 0 : i32
    return %arg0, %c0_i32 : i32, i32
  }
  func.func @transform_1(%arg0: i32) -> (i32, i32) {
    %c0_i32 = arith.constant 0 : i32
    %c0_i32_0 = arith.constant 0 : i32
    %c0_i32_1 = arith.constant 0 : i32
    return %c0_i32, %c0_i32_0 : i32, i32
  }
  func.func @transform_2(%arg0: i32) -> i32 {
    %c0_i32 = arith.constant 0 : i32
    %c0_i32_0 = arith.constant 0 : i32
    return %c0_i32 : i32
  }
  func.func @transform_3(%arg0: i32) -> (i32, i32) {
    %c0_i32 = arith.constant 0 : i32
    %c0_i32_0 = arith.constant 0 : i32
    return %c0_i32, %arg0 : i32, i32
  }
}

</mosaic_0001>

<bundles_post_ra>
// kernel: tpu_custom_call.1
= control target key start
LH: loop header
LB: loop body
LE: loop exit
PB: predicated region body
PF: predicated region fallthrough
CT: control target
= control target key end

     0   :  { %9 = vsyncpa [#allocation4], 0  ;;  %s434_s0 = inlined_call_operand.hbm [shape: f32[8,32], index: 0, kind: input, shape index: {}]   ;;  %s435_s1 = inlined_call_operand.vmem [shape: f32[1,32], index: 1, kind: input, shape index: {}]   ;;  %s436_s2 = inlined_call_operand.<no memory space> [shape: f32[1], index: 2, kind: input, shape index: {}]   ;;  %s437_s3 = inlined_call_operand.hbm [shape: f32[1,8], index: 3, kind: output, shape index: {}]  }
   0x1   :  { %10 = vsyncpa [#allocation5], 0 }
   0x2   :  { %15 = vsyncadd [#allocation4], 1920  ;;  %s354_s12 = smov [#allocation3]   ;;  %s306_s16 = scalar_lea.hbm %s434_s0, 128 }
   0x3   :  { %s16_s13 = sshll.u32 %s354_s12, 4  ;;  %p307_p0 = scmp.ne.s32.totalorder %s434_s0, %s306_s16  ;;  %s17_s13 = int_to_ptr.vmem [resolvable:$true] %s16_s13 }
   0x4   :  { %p310_p1 = scmp.lt.u32.totalorder %s306_s16, %s434_s0 }
   0x6   :  { %p312_p2 = pnand %p310_p1, %p307_p0 }
   0x8   :  { %315 = shalt.err (!%p312_p2)
}
   0x9   :  { %s316_s21 = scalar_lea.vmem %s17_s13, 128  ;;  %s320_s22 = scalar_lea.vmem %s17_s13, 2048 }
   0xa   :  { %p317_p3 = scmp.ne.s32.totalorder %s17_s13, %s316_s21  ;;  %p321_p4 = scmp.lt.s32.totalorder %s17_s13, %s17_s13 }
   0xb   :  { %p322_p5 = scmp.lt.s32.totalorder %s320_s22, %s316_s21 }
   0xd   :  { %p323_p6 = por %p322_p5, %p321_p4 }
   0xf   :  { %p324_p7 = pnand %p323_p6, %p317_p3 }
  0x11   :  { %327 = shalt.err (!%p324_p7)
}
  0x12   :  { %s355_s23 = smov 128   ;;  %s356_s24 = smov 8  }
  0x13   :  { %22 = dma.hbm_to_vmem [thread:$0]  %s434_s0, 128, %s17_s13, [#allocation4], %s355_s23, %s355_s23, %s356_s24  }
  0x14   :  { %350 = dma.done.wait [#allocation4], 2048  }
  0x15   :  { %351 = vsyncadd [#allocation4], 4294965248  ;;  %v357_v0 = vmov 0.0|0.0   ;;  %vm358_vm0 = vmmov 0   ;;  %v359_v1 = vmov 0.0   ;;  %vm49_vm1 = vcmask 261120  }
  0x16   :  { %263 = vmatprep.subr.bf16.mxu0 %v357_v0  ;;  %260 = vmatprep.mubr.msk.f32.mxu0 %vm358_vm0, %v359_v1  ;;  %v30_v2 = vld [vmem:[#allocation3] sm:$0xff]  ;;  %v31_v3 = vld [vmem:[#allocation3 + $0x8] sm:$0xff]  ;;  %vm395_vm2 = vmpackc.low %vm49_vm1, %vm49_vm1  ;;  %v48_v28 = vstv %s436_s2  ;;  %s360_s30 = smov [#allocation6]  }
  0x17   :  { %v264_v5 = vpack.c.bf16 %v31_v3, %v30_v2  ;;  %v32_v6 = vld [vmem:[#allocation3 + $0x10] sm:$0xff]  ;;  %v33_v7 = vld [vmem:[#allocation3 + $0x18] sm:$0xff]  ;;  %v34_v9 = vld [vmem:[#allocation3 + $0x20] sm:$0xff]  ;;  %s184_s4 = sshll.u32 %s360_s30, 4  ;;  %s185_s4 = int_to_ptr.vmem [resolvable:$true] %s184_s4 }
  0x18   :  { %v268_v8 = vpack.c.bf16 %v33_v7, %v32_v6  ;;  %v35_v10 = vld [vmem:[#allocation3 + $0x28] sm:$0xff]  ;;  %v36_v12 = vld [vmem:[#allocation3 + $0x30] sm:$0xff]  ;;  %v37_v13 = vld [vmem:[#allocation3 + $0x38] sm:$0xff]  ;;  %s332_s5 = scalar_lea.vmem %s185_s4, 32  ;;  %p333_p9 = scmp.lt.s32.totalorder %s185_s4, %s185_s4 }
  0x19   :  { %266 = vmatpush3.bf16.xpose.msk.msra.mxu0 %vm395_vm2, %v264_v5  ;;  %v272_v11 = vpack.c.bf16 %v35_v10, %v34_v9  ;;  %v276_v14 = vpack.c.bf16 %v37_v13, %v36_v12  ;;  %v38_v15 = vld [vmem:[#allocation3 + $0x40] sm:$0xff]  ;;  %v39_v16 = vld [vmem:[#allocation3 + $0x48] sm:$0xff]  ;;  %v40_v18 = vld [vmem:[#allocation3 + $0x50] sm:$0xff] }
  0x1a   :  { %267 = vmatprep.subr.bf16.mxu0 %v357_v0  ;;  %v280_v17 = vpack.c.bf16 %v39_v16, %v38_v15  ;;  %v41_v19 = vld [vmem:[#allocation3 + $0x58] sm:$0xff]  ;;  %v42_v21 = vld [vmem:[#allocation3 + $0x60] sm:$0xff]  ;;  %v43_v22 = vld [vmem:[#allocation3 + $0x68] sm:$0xff] }
  0x1b   :  { %v284_v20 = vpack.c.bf16 %v41_v19, %v40_v18  ;;  %v288_v23 = vpack.c.bf16 %v43_v22, %v42_v21  ;;  %v44_v24 = vld [vmem:[#allocation3 + $0x70] sm:$0xff]  ;;  %v45_v25 = vld [vmem:[#allocation3 + $0x78] sm:$0xff]  ;;  %v46_v27 = vld [vmem:[%s435_s1] sm:$0x1]  ;;  %s328_s1 = scalar_lea.vmem %s185_s4, 16 }
  0x1c   :  { %v292_v26 = vpack.c.bf16 %v45_v25, %v44_v24  ;;  %p329_p8 = scmp.ne.s32.totalorder %s185_s4, %s328_s1  ;;  %p334_p10 = scmp.lt.s32.totalorder %s332_s5, %s328_s1 }
  0x1e   :  { %p335_p11 = por %p334_p10, %p333_p9 }
  0x20   :  { %p336_p12 = pnand %p335_p11, %p329_p8 }
  0x21   :  { %270 = vmatpush3.bf16.xpose.msk.msra.mxu0 %vm395_vm2, %v268_v8 }
  0x22   :  { %271 = vmatprep.subr.bf16.mxu0 %v357_v0 }
  0x29   :  { %274 = vmatpush3.bf16.xpose.msk.msra.mxu0 %vm395_vm2, %v272_v11 }
  0x2a   :  { %275 = vmatprep.subr.bf16.mxu0 %v357_v0 }
  0x31   :  { %278 = vmatpush3.bf16.xpose.msk.msra.mxu0 %vm395_vm2, %v276_v14 }
  0x32   :  { %279 = vmatprep.subr.bf16.mxu0 %v357_v0 }
  0x39   :  { %282 = vmatpush3.bf16.xpose.msk.msra.mxu0 %vm395_vm2, %v280_v17 }
  0x3a   :  { %283 = vmatprep.subr.bf16.mxu0 %v357_v0 }
  0x41   :  { %286 = vmatpush3.bf16.xpose.msk.msra.mxu0 %vm395_vm2, %v284_v20 }
  0x42   :  { %287 = vmatprep.subr.bf16.mxu0 %v357_v0 }
  0x49   :  { %290 = vmatpush3.bf16.xpose.msk.msra.mxu0 %vm395_vm2, %v288_v23 }
  0x4a   :  { %291 = vmatprep.subr.bf16.mxu0 %v357_v0 }
  0x51   :  { %294 = vmatpush3.bf16.xpose.msk.msra.mxu0 %vm395_vm2, %v292_v26 }
  0x58   :  { %261 = vmatmul.mubr.msk.f32.vlgmr.msra.gmra.mrb[0].mxu0 %vm49_vm1, %v46_v27 }
 0x12b   :  { %v167_v29 = vpop.f32.mrb[0].mxu0 }
 0x12c   :  { %v168_v30 = vadd.f32 %v167_v29, %v48_v28  ;;  %v262_v31 = vpop.f32.mrb[1].mxu0 }
 0x12e   :  { %v210_v32 = vmul.f32 -1.442695, %v168_v30 }
 0x130   :  { %302 = vpow2.f32 %v210_v32 }
 0x13a   :  { %v303_v33 = vpop.eup %302 }
 0x13b   :  { %v174_v34 = vadd.f32 1.0, %v303_v33 }
 0x13d   :  { %304 = vrcp.f32 %v174_v34 }
 0x147   :  { %v305_v35 = vpop.eup %304 }
 0x148   :  { %177 = vst [vmem:[#allocation6] sm:$0x1] %v305_v35 }
 0x149   :  { %339 = shalt.err (!%p336_p12)
}
 0x14a   :  { %s340_s7 = scalar_lea.hbm %s437_s3, 16 }
 0x14b   :  { %p341_p13 = scmp.ne.s32.totalorder %s437_s3, %s340_s7  ;;  %p344_p0 = scmp.lt.u32.totalorder %s340_s7, %s437_s3 }
 0x14d   :  { %p346_p1 = pnand %p344_p0, %p341_p13 }
 0x14f   :  { %349 = shalt.err (!%p346_p1)
}
 0x150   :  { %187 = dma.vmem_to_hbm [thread:$0]  %s185_s4, 16, %s437_s3, [#allocation5]  }
 0x151   :  { %352 = dma.done.wait [#allocation5], 16  }
 0x152   :  { %353 = vsyncadd [#allocation5], 4294967280 }
 0x153   :  { %191 = vsyncpa [#allocation4], 1 }
 0x154   :  { %192 = vsyncpa [#allocation5], 1 }

</bundles_post_ra>
